<compile_context>
chip_gen: v5e
topology: v5e:2x2
jax: 0.10.0
libtpu: 0.0.40
codegen_flags: <defaults>
</compile_context>

<pallas_src>
import math
import functools

import jax
import jax.numpy as jnp
from jax.experimental import pallas as pl
from jax.experimental.pallas import tpu as pltpu


def _decomp_kernel(x_ref, res_ref, mean_ref, *, kernel_size, seq_len, channels):
    K = kernel_size
    L = seq_len
    C = channels
    Lp = L + K - 1
    FP = K - 1 - (K - 1) // 2   # front replicate pad (matches the torch module)
    EP = (K - 1) // 2           # end replicate pad

    # x_ref is the flat (TB, L*C) block; load once, compute in f32.
    x = x_ref[...].astype(jnp.float32)

    # ---- replicate-padded sequence, built in registers/VMEM (never in HBM) ----
    if FP > 0 or EP > 0:
        parts = [x[:, 0:C]] * FP + [x] + [x[:, (L - 1) * C:L * C]] * EP
        pad = jnp.concatenate(parts, axis=1)        # (TB, Lp*C)
    else:
        pad = x

    # ---- sliding-window sum of width K via width doubling (O(log2 K) adds) ----
    # `cur` holds width-w sums: cur[:, i*C + c] = sum_{j<w} pad[:, (i+j)*C + c],
    # valid for i in [0, Lp - w].
    acc = None
    covered = 0      # prefix of the K-wide window already accumulated into acc
    w = 1
    cur = pad
    rem = K
    while True:
        if rem & 1:
            seg = cur[:, covered * C:(covered + L) * C]
            acc = seg if acc is None else acc + seg
            covered += w
        rem >>= 1
        if rem == 0:
            break
        n = Lp - 2 * w + 1                          # valid starts for width 2w
        cur = cur[:, 0:n * C] + cur[:, w * C:(w + n) * C]
        w *= 2

    mean = acc * (1.0 / K)
    mean_ref[...] = mean.astype(mean_ref.dtype)
    res_ref[...] = (x - mean).astype(res_ref.dtype)


def series_decomp(x, kernel_size):
    """JAX/Pallas equivalent of series_decomp.forward.

    Args:
      x: (B, L, C) array (batch, time, channels).
      kernel_size: int moving-average window (stride 1, replicate edge padding).

    Returns:
      (res, moving_mean), both (B, L, C).
    """
    B, L, C = x.shape
    K = int(kernel_size)

    # Free row-major reshape: fold (time, channel) onto the 128-lane axis so the
    # kernel stays lane-dense even when C << 128.
    x_flat = x.reshape(B, L * C)

    TB = min(B, 8)                 # fold batches onto sublanes
    grid = (pl.cdiv(B, TB),)

    kernel = functools.partial(_decomp_kernel, kernel_size=K, seq_len=L, channels=C)

    itemsize = x.dtype.itemsize
    cost = pl.CostEstimate(
        flops=2 * (K.bit_length() + 2) * B * L * C,
        transcendentals=0,
        bytes_accessed=3 * B * L * C * itemsize,   # 1 read + 2 writes
    )

    res, mean = pl.pallas_call(
        kernel,
        out_shape=(
            jax.ShapeDtypeStruct((B, L * C), x.dtype),
            jax.ShapeDtypeStruct((B, L * C), x.dtype),
        ),
        grid_spec=pltpu.PrefetchScalarGridSpec(
            num_scalar_prefetch=0,
            grid=grid,
            in_specs=[pl.BlockSpec((TB, L * C), lambda i: (i, 0))],
            out_specs=[
                pl.BlockSpec((TB, L * C), lambda i: (i, 0)),
                pl.BlockSpec((TB, L * C), lambda i: (i, 0)),
            ],
        ),
        compiler_params=pltpu.CompilerParams(
            dimension_semantics=("parallel",),
            vmem_limit_bytes=32 * 1024 * 1024,
        ),
        cost_estimate=cost,
    )(x_flat)

    return res.reshape(B, L, C), mean.reshape(B, L, C)


def _reference(x, kernel_size):
    # Pure-JAX reference replicating the PyTorch module exactly
    # (front = K-1-(K-1)//2 replicated rows, end = (K-1)//2, AvgPool1d stride 1).
    front_pad = kernel_size - 1 - math.floor((kernel_size - 1) // 2)
    end_pad = math.floor((kernel_size - 1) // 2)
    front = jnp.repeat(x[:, 0:1, :], front_pad, axis=1)
    end = jnp.repeat(x[:, -1:, :], end_pad, axis=1)
    xp = jnp.concatenate([front, x, end], axis=1)
    L = x.shape[1]
    windows = jnp.stack([xp[:, k:k + L, :] for k in range(kernel_size)], axis=0)
    mean = jnp.mean(windows, axis=0)
    return x - mean, mean


if __name__ == "__main__":
    key = jax.random.PRNGKey(0)
    configs = [
        ((2, 16, 8), 5),    # small shapes, C << 128 -> exercises flat lane-dense path
        ((2, 16, 8), 4),    # even kernel_size (asymmetric replicate pad)
        ((3, 24, 7), 25),   # DLinear-style default window, odd channel count
    ]
    for shape, ks in configs:
        key, sub = jax.random.split(key)
        x = jax.random.normal(sub, shape, dtype=jnp.float32)

        res, mean = series_decomp(x, ks)
        jax.block_until_ready((res, mean))

        res_ref, mean_ref = _reference(x, ks)
        assert jnp.allclose(mean, mean_ref, atol=1e-5, rtol=1e-5), (shape, ks)
        assert jnp.allclose(res, res_ref, atol=1e-5, rtol=1e-5), (shape, ks)

    print("KERNEL_OK")
</pallas_src>

<mosaic_0001>
module attributes {stable_mosaic.version = 11 : i64} {
  func.func @_decomp_kernel(%arg0: i32, %arg1: memref<2x128xf32, #tpu.memory_space<vmem>>, %arg2: memref<2x128xf32, #tpu.memory_space<vmem>>, %arg3: memref<2x128xf32, #tpu.memory_space<vmem>>) attributes {dimension_semantics = [#tpu.dimension_semantics<parallel>], iteration_bounds = array<i64: 1>, scalar_prefetch = 0 : i64, scratch_operands = 0 : i64, tpu.core_type = #tpu.core_type<tc>, window_params = [{transform_indices = @transform_0, window_bounds = array<i64: 2, 128>}, {transform_indices = @transform_1, window_bounds = array<i64: 2, 128>}, {transform_indices = @transform_2, window_bounds = array<i64: 2, 128>}]} {
    %c0 = arith.constant 0 : index
    %c0_0 = arith.constant 0 : index
    %0 = vector.load %arg1[%c0, %c0_0] : memref<2x128xf32, #tpu.memory_space<vmem>>, vector<2x128xf32>
    %1 = vector.extract_strided_slice %0 {offsets = [0, 0], sizes = [2, 8], strides = [1, 1]} : vector<2x128xf32> to vector<2x8xf32>
    %2 = vector.extract_strided_slice %0 {offsets = [0, 120], sizes = [2, 8], strides = [1, 1]} : vector<2x128xf32> to vector<2x8xf32>
    %3 = tpu.concatenate %1, %1, %0, %2, %2 in 1 : vector<2x8xf32>, vector<2x8xf32>, vector<2x128xf32>, vector<2x8xf32>, vector<2x8xf32> -> vector<2x160xf32>
    %4 = vector.extract_strided_slice %3 {offsets = [0, 0], sizes = [2, 128], strides = [1, 1]} : vector<2x160xf32> to vector<2x128xf32>
    %5 = vector.extract_strided_slice %3 {offsets = [0, 0], sizes = [2, 152], strides = [1, 1]} : vector<2x160xf32> to vector<2x152xf32>
    %6 = vector.extract_strided_slice %3 {offsets = [0, 8], sizes = [2, 152], strides = [1, 1]} : vector<2x160xf32> to vector<2x152xf32>
    %7 = arith.addf %5, %6 : vector<2x152xf32>
    %8 = vector.extract_strided_slice %7 {offsets = [0, 0], sizes = [2, 136], strides = [1, 1]} : vector<2x152xf32> to vector<2x136xf32>
    %9 = vector.extract_strided_slice %7 {offsets = [0, 16], sizes = [2, 136], strides = [1, 1]} : vector<2x152xf32> to vector<2x136xf32>
    %10 = arith.addf %8, %9 : vector<2x136xf32>
    %11 = vector.extract_strided_slice %10 {offsets = [0, 8], sizes = [2, 128], strides = [1, 1]} : vector<2x136xf32> to vector<2x128xf32>
    %12 = arith.addf %4, %11 : vector<2x128xf32>
    %cst = arith.constant 2.000000e-01 : f32
    %13 = vector.broadcast %cst : f32 to vector<2x128xf32>
    %14 = arith.mulf %12, %13 : vector<2x128xf32>
    %c0_1 = arith.constant 0 : index
    %c0_2 = arith.constant 0 : index
    %15 = vector.load %arg3[%c0_1, %c0_2] : memref<2x128xf32, #tpu.memory_space<vmem>>, vector<2x128xf32>
    tpu.vector_store %arg3[%c0_1, %c0_2], %14 {strides = array<i32>} : memref<2x128xf32, #tpu.memory_space<vmem>>, vector<2x128xf32>,
    %16 = arith.subf %0, %14 : vector<2x128xf32>
    %c0_3 = arith.constant 0 : index
    %c0_4 = arith.constant 0 : index
    %17 = vector.load %arg2[%c0_3, %c0_4] : memref<2x128xf32, #tpu.memory_space<vmem>>, vector<2x128xf32>
    tpu.vector_store %arg2[%c0_3, %c0_4], %16 {strides = array<i32>} : memref<2x128xf32, #tpu.memory_space<vmem>>, vector<2x128xf32>,
    return
  }
  func.func @transform_0(%arg0: i32) -> (i32, i32) {
    %c0_i32 = arith.constant 0 : i32
    %c0_i32_0 = arith.constant 0 : i32
    return %arg0, %c0_i32 : i32, i32
  }
  func.func @transform_1(%arg0: i32) -> (i32, i32) {
    %c0_i32 = arith.constant 0 : i32
    %c0_i32_0 = arith.constant 0 : i32
    return %arg0, %c0_i32 : i32, i32
  }
  func.func @transform_2(%arg0: i32) -> (i32, i32) {
    %c0_i32 = arith.constant 0 : i32
    %c0_i32_0 = arith.constant 0 : i32
    return %arg0, %c0_i32 : i32, i32
  }
}

</mosaic_0001>

<bundles_post_ra>
// kernel: tpu_custom_call.1
= control target key start
LH: loop header
LB: loop body
LE: loop exit
PB: predicated region body
PF: predicated region fallthrough
CT: control target
= control target key end

     0   :  { %8 = vsyncpa [#allocation3], 0  ;;  %s239_s0 = inlined_call_operand.hbm [shape: f32[2,128], index: 0, kind: input, shape index: {}]   ;;  %s240_s1 = inlined_call_operand.hbm [shape: f32[2,128], index: 1, kind: output, shape index: {0}]   ;;  %s241_s2 = inlined_call_operand.hbm [shape: f32[2,128], index: 2, kind: output, shape index: {1}]  }
   0x1   :  { %9 = vsyncpa [#allocation4], 0 }
   0x2   :  { %10 = vsyncpa [#allocation7], 0  ;;  %s16_s11 = sshll.u32 %s239_s0, 4  ;;  %s204_s12 = smov [#allocation2]   ;;  %s17_s11 = int_to_ptr.hbm [resolvable:$true] %s16_s11 }
   0x3   :  { %s18_s13 = sshll.u32 %s204_s12, 4  ;;  %s19_s13 = int_to_ptr.vmem [resolvable:$true] %s18_s13 }
   0x4   :  { %21 = dma.hbm_to_vmem [thread:$0]  %s17_s11, 32, %s19_s13, [#allocation3]  }
   0x5   :  { %198 = dma.done.wait [#allocation3], 32  }
   0x6   :  { %199 = vsyncadd [#allocation3], 4294967264  ;;  %v26_v0 = vld [vmem:[#allocation2] sm:$0x3]  ;;  %s205_s14 = smov 8   ;;  %s206_s15 = smov 24  }
   0x7   :  { %28 = vrot.lane.b32.xlu0 %v26_v0, %s205_s14  ;;  %34 = vrot.lane.b32.xlu1 %v26_v0, %s206_s15  ;;  %s207_s16 = smov 16   ;;  %s208_s17 = smov 32   ;;  %vm40_vm0 = vcmask 64512   ;;  %vm42_vm1 = vcmask 130048   ;;  %vm45_vm2 = vcmask 195584   ;;  %vm53_vm3 = vcmask 982016  }
   0x8   :  { %s209_s0 = smov 120   ;;  %s210_s18 = smov 112   ;;  %vm65_vm4 = vcmask 916480  }
   0x9   :  { %s211_s19 = smov [#allocation6]   ;;  %s102_s23 = sshll.u32 %s241_s2, 4  ;;  %s103_s23 = int_to_ptr.hbm [resolvable:$true] %s102_s23 }
   0xa   :  { %s100_s20 = sshll.u32 %s211_s19, 4  ;;  %s212_s24 = smov [#allocation5]   ;;  %s101_s20 = int_to_ptr.vmem [resolvable:$true] %s100_s20 }
   0xb   :  { %s89_s25 = sshll.u32 %s212_s24, 4  ;;  %s91_s28 = sshll.u32 %s240_s1, 4  ;;  %s90_s25 = int_to_ptr.vmem [resolvable:$true] %s89_s25  ;;  %s92_s28 = int_to_ptr.hbm [resolvable:$true] %s91_s28 }
   0xf   :  { %31 = vrot.lane.b32.xlu0 %v26_v0, %s207_s16  ;;  %37 = vrot.lane.b32.xlu1 %v26_v0, %s208_s17 }
  0x79   :  { %v29_v1 = vpop.permute.xlu0 %28  ;;  %v35_v2 = vpop.permute.xlu1 %34 }
  0x7a   :  { %v41_v3 = vsel %vm40_vm0, %v26_v0, %v29_v1 }
  0x81   :  { %v32_v4 = vpop.permute.xlu0 %31  ;;  %v38_v7 = vpop.permute.xlu1 %37 }
  0x82   :  { %v43_v5 = vsel %vm42_vm1, %v41_v3, %v32_v4  ;;  %v44_v6 = vsel %vm42_vm1, %v32_v4, %v35_v2 }
  0x83   :  { %49 = vrot.lane.b32.xlu2 %v43_v5, %s209_s0  ;;  %v46_v8 = vsel %vm45_vm2, %v44_v6, %v38_v7 }
  0x8b   :  { %51 = vrot.lane.b32.xlu2 %v46_v8, %s209_s0 }
  0xdd   :  { %v50_v9 = vpop.permute.xlu2 %49 }
  0xe5   :  { %v52_v10 = vpop.permute.xlu2 %51 }
  0xe6   :  { %v54_v11 = vsel %vm53_vm3, %v50_v9, %v52_v10  ;;  %v58_v12 = vadd.f32 %v52_v10, %v46_v8 }
  0xe7   :  { %v57_v13 = vadd.f32 %v54_v11, %v43_v5 }
  0xe8   :  { %63 = vrot.lane.b32.xlu1 %v58_v12, %s210_s18 }
  0xe9   :  { %61 = vrot.lane.b32.xlu0 %v57_v13, %s210_s18 }
 0x15a   :  { %v64_v14 = vpop.permute.xlu1 %63 }
 0x15b   :  { %v70_v15 = vadd.f32 %v64_v14, %v58_v12  ;;  %v62_v16 = vpop.permute.xlu0 %61 }
 0x15c   :  { %v66_v17 = vsel %vm65_vm4, %v62_v16, %v64_v14 }
 0x15d   :  { %v69_v18 = vadd.f32 %v66_v17, %v57_v13  ;;  %75 = vrot.lane.b32.xlu0 %v70_v15, %s209_s0 }
 0x15f   :  { %73 = vrot.lane.b32.xlu2 %v69_v18, %s209_s0 }
 0x1b9   :  { %v74_v19 = vpop.permute.xlu2 %73 }
 0x1cf   :  { %v76_v20 = vpop.permute.xlu0 %75 }
 0x1d0   :  { %v77_v21 = vsel %vm53_vm3, %v74_v19, %v76_v20 }
 0x1d1   :  { %v79_v22 = vadd.f32 %v77_v21, %v43_v5 }
 0x1d3   :  { %v80_v23 = vmul.f32 0.2, %v79_v22 }
 0x1d5   :  { %v82_v24 = vsub.f32 %v26_v0, %v80_v23  ;;  %81 = vst [vmem:[#allocation6] sm:$0x3] %v80_v23 }
 0x1d6   :  { %105 = dma.vmem_to_hbm [thread:$0]  %s101_s20, 32, %s103_s23, [#allocation7]  }
 0x1d7   :  { %83 = vst [vmem:[#allocation5] sm:$0x3] %v82_v24 }
 0x1d8   :  { %94 = dma.vmem_to_hbm [thread:$0]  %s90_s25, 32, %s92_s28, [#allocation4]  }
 0x1d9   :  { %200 = dma.done.wait [#allocation4], 32  }
 0x1da   :  { %201 = vsyncadd [#allocation4], 4294967264 }
 0x1db   :  { %202 = dma.done.wait [#allocation7], 32  }
 0x1dc   :  { %203 = vsyncadd [#allocation7], 4294967264 }
 0x1dd   :  { %114 = vsyncpa [#allocation3], 1 }
 0x1de   :  { %115 = vsyncpa [#allocation4], 1 }
 0x1df   :  { %116 = vsyncpa [#allocation7], 1 }

</bundles_post_ra>
